<compile_context>
chip_gen: v7x
topology: tpu7x:2x2x1
jax: 0.10.0
libtpu: 0.0.40
codegen_flags: <defaults>
</compile_context>

<pallas_src>
import functools

import jax
import jax.numpy as jnp
from jax import lax
from jax.experimental import pallas as pl
from jax.experimental.pallas import tpu as pltpu


# ---------------------------------------------------------------------------
# Kernel
# ---------------------------------------------------------------------------
def _fused_linear_kernel(x_ref, w_ref, b_ref, *rest, mxu_dtype, apply_hook):
    """One (i, j, k) grid step of out = hook(x @ W^T + b).

    x_ref:     (tm, tk)  activation tile
    w_ref:     (tn, tk)  weight tile in PyTorch (d_out, d_in) layout
    b_ref:     (1,  tn)  bias slice (fetched once per output-column tile)
    delta_ref: (tm, tn)  additive hook perturbation tile (only if apply_hook)
    o_ref:     (tm, tn)  output tile
    acc_ref:   (tm, tn)  f32 VMEM accumulator, resident across the k axis
    """
    if apply_hook:
        delta_ref, o_ref, acc_ref = rest
    else:
        o_ref, acc_ref = rest
        delta_ref = None

    k = pl.program_id(2)

    @pl.when(k == 0)
    def _():
        acc_ref[...] = jnp.zeros_like(acc_ref)

    x = x_ref[...]
    w = w_ref[...]
    if mxu_dtype is not None:
        x = x.astype(mxu_dtype)
        w = w.astype(mxu_dtype)

    # x @ W^T: contract the d_in axis of both tiles on the MXU, accumulate f32.
    acc_ref[...] += lax.dot_general(
        x, w,
        dimension_numbers=(((1,), (1,)), ((), ())),
        preferred_element_type=jnp.float32,
    )

    # Epilogue once per output tile: bias + hook(delta) + cast, hidden under
    # the next tile's DMA.
    @pl.when(k == pl.num_programs(2) - 1)
    def _():
        y = acc_ref[...] + b_ref[...].astype(jnp.float32)
        if delta_ref is not None:
            y = y + delta_ref[...].astype(jnp.float32)
        o_ref[...] = y.astype(o_ref.dtype)


# ---------------------------------------------------------------------------
# Tiling helpers
# ---------------------------------------------------------------------------
def _pick_tile(dim, max_tile, step):
    """Largest multiple-of-`step` tile <= max_tile that divides dim, else full dim."""
    t = min(max_tile, dim)
    t -= t % step
    while t >= step:
        if dim % t == 0:
            return t
        t -= step
    return dim  # full-dim escape of the (8, 128) rule


def _tile_maxima():
    """Per-generation tile budget: v5e/v6e have 128 MiB VMEM, v7x only 64 MiB."""
    try:
        vmem = int(getattr(pltpu.get_tpu_info(), "vmem_capacity_bytes", 0))
    except Exception:  # pragma: no cover - info query unavailable
        vmem = 0
    if vmem >= (100 << 20):
        # v5e / v6e: big tiles amortize per-step overhead; raise scoped VMEM.
        return 512, 1024, 512, 64 << 20
    # v7x (or unknown): conservative tiles fit the 32 MiB scoped default
    # with 2-deep buffering.
    return 256, 512, 512, None


# ---------------------------------------------------------------------------
# Wrapper (CustomHook.forward semantics)
# ---------------------------------------------------------------------------
def custom_hook_forward(x, weight, bias, delta=None, *, enabled=True,
                        extra_outputs=(), mxu_dtype=None, force_pallas=False):
    """JAX/Pallas equivalent of CustomHook.forward with a Linear wrapped module.

    x:      (B, S, d_in)   activations fed to the wrapped module
    weight: (d_out, d_in)  wrapped nn.Linear weight (PyTorch layout, NOT transposed)
    bias:   (d_out,)       wrapped nn.Linear bias
    delta:  (B, S, d_out)  hook_fn's additive perturbation (required if enabled)
    enabled:       CustomHook.enabled — if False the hook is skipped.
    extra_outputs: mimics the tuple case — hook applies only to output[0].
    mxu_dtype:     e.g. jnp.bfloat16 to run the MXU in bf16 (f32 accumulation);
                   None keeps the input dtype (exact PyTorch-Linear semantics).
    """
    B, S, d_in = x.shape
    d_out = weight.shape[0]
    M = B * S
    if enabled and delta is None:
        raise ValueError("delta is required when the hook is enabled")

    # Tiny shapes: launch/DMA overhead dominates — let XLA fuse it.
    if not force_pallas and (M < 256 or min(d_in, d_out) < 512):
        out = jnp.einsum("bsi,oi->bso", x, weight,
                         preferred_element_type=jnp.float32).astype(x.dtype) + bias
        if enabled:
            out = out + delta
        out = out.astype(x.dtype)
        if extra_outputs:
            return (out,) + tuple(extra_outputs)
        return out

    max_tm, max_tn, max_tk, vmem_limit = _tile_maxima()
    tm = _pick_tile(M, max_tm, 8)
    tn = _pick_tile(d_out, max_tn, 128)
    tk = _pick_tile(d_in, max_tk, 128)
    grid = (M // tm, d_out // tn, d_in // tk)

    x2d = x.reshape(M, d_in)
    b2d = bias.reshape(1, d_out)

    in_specs = [
        pl.BlockSpec((tm, tk), lambda i, j, k: (i, k)),   # x tile
        pl.BlockSpec((tn, tk), lambda i, j, k: (j, k)),   # W tile (d_out, d_in)
        pl.BlockSpec((1, tn), lambda i, j, k: (0, j)),    # bias slice
    ]
    operands = [x2d, weight, b2d]
    bytes_accessed = (x2d.size * x2d.dtype.itemsize
                      + weight.size * weight.dtype.itemsize
                      + bias.size * bias.dtype.itemsize
                      + M * d_out * x.dtype.itemsize)
    if enabled:
        delta2d = delta.reshape(M, d_out)
        in_specs.append(pl.BlockSpec((tm, tn), lambda i, j, k: (i, j)))  # delta
        operands.append(delta2d)
        bytes_accessed += delta2d.size * delta2d.dtype.itemsize

    kernel = functools.partial(_fused_linear_kernel,
                               mxu_dtype=mxu_dtype, apply_hook=enabled)

    out2d = pl.pallas_call(
        kernel,
        out_shape=jax.ShapeDtypeStruct((M, d_out), x.dtype),
        grid=grid,
        in_specs=in_specs,
        out_specs=pl.BlockSpec((tm, tn), lambda i, j, k: (i, j)),
        scratch_shapes=[pltpu.VMEM((tm, tn), jnp.float32)],
        compiler_params=pltpu.CompilerParams(
            dimension_semantics=("parallel", "parallel", "arbitrary"),
            vmem_limit_bytes=vmem_limit,
        ),
        cost_estimate=pl.CostEstimate(
            flops=2 * M * d_in * d_out,
            transcendentals=0,
            bytes_accessed=bytes_accessed,
        ),
    )(*operands)

    out = out2d.reshape(B, S, d_out)
    if extra_outputs:
        # tuple case of CustomHook: hook applied only to module_output[0].
        return (out,) + tuple(extra_outputs)
    return out


# ---------------------------------------------------------------------------
# Demo / self-test
# ---------------------------------------------------------------------------
if __name__ == "__main__":
    key = jax.random.PRNGKey(0)
    kx, kw, kb, kd = jax.random.split(key, 4)

    B, S, D = 2, 8, 32  # batch, seq, hidden (small demo shapes)

    x = jax.random.normal(kx, (B, S, D), dtype=jnp.float32)
    weight = jax.random.normal(kw, (D, D), dtype=jnp.float32) * 0.05
    bias = jax.random.normal(kb, (D,), dtype=jnp.float32) * 0.01
    delta = jax.random.normal(kd, (B, S, D), dtype=jnp.float32) * 0.1

    ref_hooked = jnp.einsum("bsi,oi->bso", x, weight) + bias + delta
    ref_plain = jnp.einsum("bsi,oi->bso", x, weight) + bias

    # 1) Pallas tiled kernel, hook enabled (f32 MXU inputs -> tight tolerance).
    out = custom_hook_forward(x, weight, bias, delta, enabled=True,
                              force_pallas=True)
    out = jax.block_until_ready(out)
    assert out.shape == (B, S, D)
    assert jnp.allclose(out, ref_hooked, atol=1e-5, rtol=1e-5)

    # 2) Pallas tiled kernel, hook disabled (CustomHook.enabled == False).
    out_disabled = jax.block_until_ready(
        custom_hook_forward(x, weight, bias, delta, enabled=False,
                            force_pallas=True))
    assert jnp.allclose(out_disabled, ref_plain, atol=1e-5, rtol=1e-5)

    # 3) bf16-MXU perf configuration (f32 accumulation) -> relaxed tolerance.
    out_bf16 = jax.block_until_ready(
        custom_hook_forward(x, weight, bias, delta, enabled=True,
                            force_pallas=True, mxu_dtype=jnp.bfloat16))
    assert jnp.allclose(out_bf16, ref_hooked, atol=5e-2, rtol=5e-2)

    # 4) Small-shape dispatch: without force_pallas this falls back to XLA fusion.
    out_xla = jax.block_until_ready(
        custom_hook_forward(x, weight, bias, delta, enabled=True))
    assert jnp.allclose(out_xla, ref_hooked, atol=1e-5, rtol=1e-5)

    # 5) Tuple case: hook applied only to the first output, extras untouched.
    extra = jnp.ones((3,), jnp.float32)
    out_tuple = custom_hook_forward(x, weight, bias, delta, enabled=True,
                                    force_pallas=True, extra_outputs=(extra,))
    jax.block_until_ready(out_tuple[0])
    assert jnp.allclose(out_tuple[0], ref_hooked, atol=1e-5, rtol=1e-5)
    assert out_tuple[1] is extra

    print("KERNEL_OK")
</pallas_src>

<mosaic_0001>
module attributes {stable_mosaic.version = 11 : i64} {
  func.func @_fused_linear_kernel(%arg0: i32, %arg1: i32, %arg2: i32, %arg3: memref<16x32xf32, #tpu.memory_space<vmem>>, %arg4: memref<32x32xf32, #tpu.memory_space<vmem>>, %arg5: memref<1x32xf32, #tpu.memory_space<vmem>>, %arg6: memref<16x32xf32, #tpu.memory_space<vmem>>, %arg7: memref<16x32xf32, #tpu.memory_space<vmem>>, %arg8: memref<16x32xf32, #tpu.memory_space<vmem>>) attributes {dimension_semantics = [#tpu.dimension_semantics<parallel>, #tpu.dimension_semantics<parallel>, #tpu.dimension_semantics<arbitrary>], iteration_bounds = array<i64: 1, 1, 1>, scalar_prefetch = 0 : i64, scratch_operands = 1 : i64, tpu.core_type = #tpu.core_type<tc>, window_params = [{transform_indices = @transform_0, window_bounds = array<i64: 16, 32>}, {transform_indices = @transform_1, window_bounds = array<i64: 32, 32>}, {transform_indices = @transform_2, window_bounds = array<i64: 1, 32>}, {transform_indices = @transform_3, window_bounds = array<i64: 16, 32>}, {transform_indices = @transform_4, window_bounds = array<i64: 16, 32>}]} {
    %c0_i32 = arith.constant 0 : i32
    %0 = arith.cmpi eq, %arg2, %c0_i32 : i32
    %1 = arith.extui %0 : i1 to i32
    %c0_i32_0 = arith.constant 0 : i32
    %2 = arith.cmpi ne, %1, %c0_i32_0 : i32
    scf.if %2 {
      %cst_10 = arith.constant 0.000000e+00 : f32
      %12 = vector.broadcast %cst_10 : f32 to vector<16x32xf32>
      %c0_11 = arith.constant 0 : index
      %c0_12 = arith.constant 0 : index
      %13 = vector.load %arg8[%c0_11, %c0_12] : memref<16x32xf32, #tpu.memory_space<vmem>>, vector<16x32xf32>
      tpu.vector_store %arg8[%c0_11, %c0_12], %12 {strides = array<i32>} : memref<16x32xf32, #tpu.memory_space<vmem>>, vector<16x32xf32>,
    } else {
    }
    %c0 = arith.constant 0 : index
    %c0_1 = arith.constant 0 : index
    %3 = vector.load %arg3[%c0, %c0_1] : memref<16x32xf32, #tpu.memory_space<vmem>>, vector<16x32xf32>
    %c0_2 = arith.constant 0 : index
    %c0_3 = arith.constant 0 : index
    %4 = vector.load %arg4[%c0_2, %c0_3] : memref<32x32xf32, #tpu.memory_space<vmem>>, vector<32x32xf32>
    %c0_4 = arith.constant 0 : index
    %c0_5 = arith.constant 0 : index
    %5 = vector.load %arg8[%c0_4, %c0_5] : memref<16x32xf32, #tpu.memory_space<vmem>>, vector<16x32xf32>
    %cst = arith.constant dense<0.000000e+00> : vector<16x32xf32>
    %6 = tpu.matmul %3, %4, %cst {dimension_numbers = #tpu.dot_dimension_numbers<[1], [1], [0], [0], [0, 0, 1, 0], [], []>} : vector<16x32xf32>, vector<32x32xf32>, vector<16x32xf32> -> vector<16x32xf32>
    %7 = arith.addf %5, %6 : vector<16x32xf32>
    %c0_6 = arith.constant 0 : index
    %c0_7 = arith.constant 0 : index
    %8 = vector.load %arg8[%c0_6, %c0_7] : memref<16x32xf32, #tpu.memory_space<vmem>>, vector<16x32xf32>
    tpu.vector_store %arg8[%c0_6, %c0_7], %7 {strides = array<i32>} : memref<16x32xf32, #tpu.memory_space<vmem>>, vector<16x32xf32>,
    %c0_i32_8 = arith.constant 0 : i32
    %9 = arith.cmpi eq, %arg2, %c0_i32_8 : i32
    %10 = arith.extui %9 : i1 to i32
    %c0_i32_9 = arith.constant 0 : i32
    %11 = arith.cmpi ne, %10, %c0_i32_9 : i32
    scf.if %11 {
      %c0_10 = arith.constant 0 : index
      %c0_11 = arith.constant 0 : index
      %12 = vector.load %arg8[%c0_10, %c0_11] : memref<16x32xf32, #tpu.memory_space<vmem>>, vector<16x32xf32>
      %c0_12 = arith.constant 0 : index
      %c0_13 = arith.constant 0 : index
      %13 = vector.load %arg5[%c0_12, %c0_13] : memref<1x32xf32, #tpu.memory_space<vmem>>, vector<1x32xf32>
      %14 = vector.broadcast %13 : vector<1x32xf32> to vector<16x32xf32>
      %15 = arith.addf %12, %14 : vector<16x32xf32>
      %c0_14 = arith.constant 0 : index
      %c0_15 = arith.constant 0 : index
      %16 = vector.load %arg6[%c0_14, %c0_15] : memref<16x32xf32, #tpu.memory_space<vmem>>, vector<16x32xf32>
      %17 = arith.addf %15, %16 : vector<16x32xf32>
      %c0_16 = arith.constant 0 : index
      %c0_17 = arith.constant 0 : index
      %18 = vector.load %arg7[%c0_16, %c0_17] : memref<16x32xf32, #tpu.memory_space<vmem>>, vector<16x32xf32>
      tpu.vector_store %arg7[%c0_16, %c0_17], %17 {strides = array<i32>} : memref<16x32xf32, #tpu.memory_space<vmem>>, vector<16x32xf32>,
    } else {
    }
    return
  }
  func.func @transform_0(%arg0: i32, %arg1: i32, %arg2: i32) -> (i32, i32) {
    %c0_i32 = arith.constant 0 : i32
    return %arg0, %arg2 : i32, i32
  }
  func.func @transform_1(%arg0: i32, %arg1: i32, %arg2: i32) -> (i32, i32) {
    %c0_i32 = arith.constant 0 : i32
    return %arg1, %arg2 : i32, i32
  }
  func.func @transform_2(%arg0: i32, %arg1: i32, %arg2: i32) -> (i32, i32) {
    %c0_i32 = arith.constant 0 : i32
    %c0_i32_0 = arith.constant 0 : i32
    return %c0_i32, %arg1 : i32, i32
  }
  func.func @transform_3(%arg0: i32, %arg1: i32, %arg2: i32) -> (i32, i32) {
    %c0_i32 = arith.constant 0 : i32
    return %arg0, %arg1 : i32, i32
  }
  func.func @transform_4(%arg0: i32, %arg1: i32, %arg2: i32) -> (i32, i32) {
    %c0_i32 = arith.constant 0 : i32
    return %arg0, %arg1 : i32, i32
  }
}

</mosaic_0001>

<bundles_post_ra>
// kernel: tpu_custom_call.1
= control target key start
LH: loop header
LB: loop body
LE: loop exit
PB: predicated region body
PF: predicated region fallthrough
CT: control target
= control target key end

     0   :  { %9 = vsyncpa [#allocation4], 0  ;;  %s459_s0 = inlined_call_operand.hbm [shape: f32[16,32], index: 0, kind: input, shape index: {}]   ;;  %s460_s1 = inlined_call_operand.hbm [shape: f32[32,32], index: 1, kind: input, shape index: {}]   ;;  %s461_s2 = inlined_call_operand.vmem [shape: f32[1,32], index: 2, kind: input, shape index: {}]   ;;  %s462_s3 = inlined_call_operand.hbm [shape: f32[16,32], index: 3, kind: input, shape index: {}]   ;;  %s463_s4 = inlined_call_operand.hbm [shape: f32[16,32], index: 4, kind: output, shape index: {}]  }
   0x1   :  { %10 = vsyncpa [#allocation7], 0 }
   0x2   :  { %11 = vsyncpa [#allocation5], 0  ;;  %s347_s15 = smov [#allocation6]   ;;  %s348_s17 = smov [#allocation3]  }
   0x3   :  { %s29_s16 = sshll.u32 %s347_s15, 4  ;;  %s17_s18 = sshll.u32 %s348_s17, 4  ;;  %s30_s16 = int_to_ptr.vmem [resolvable:$true] %s29_s16  ;;  %s379_s18 = int_to_ptr.vmem [resolvable:$true] %s17_s18 }
   0x4   :  { %s253_s21 = scalar_lea.hbm %s460_s1, 512 }
   0x5   :  { %p254_p0 = scmp.ne.s32.totalorder %s460_s1, %s253_s21  ;;  %p257_p1 = scmp.lt.u32.totalorder %s253_s21, %s460_s1 }
   0x7   :  { %p259_p2 = pnand %p257_p1, %p254_p0 }
   0x9   :  { %262 = shalt.err (!%p259_p2)
}
   0xa   :  { %s263_s26 = scalar_lea.vmem %s30_s16, 512  ;;  %p268_p4 = scmp.lt.s32.totalorder %s30_s16, %s30_s16 }
   0xb   :  { %p264_p3 = scmp.ne.s32.totalorder %s30_s16, %s263_s26  ;;  %p269_p5 = scmp.lt.s32.totalorder %s263_s26, %s263_s26 }
   0xd   :  { %p270_p6 = por %p269_p5, %p268_p4 }
   0xf   :  { %p271_p7 = pnand %p270_p6, %p264_p3 }
  0x11   :  { %274 = shalt.err (!%p271_p7)
}
  0x12   :  { %s349_s27 = smov 128   ;;  %s350_s28 = smov 8  }
  0x13   :  { %35 = dma.hbm_to_vmem [thread:$0]  %s460_s1, 512, %s30_s16, [#allocation7], %s349_s27, %s349_s27, %s350_s28  }
  0x14   :  { %s275_s7 = scalar_lea.hbm %s459_s0, 256 }
  0x15   :  { %p276_p8 = scmp.ne.s32.totalorder %s459_s0, %s275_s7  ;;  %p279_p9 = scmp.lt.u32.totalorder %s275_s7, %s459_s0 }
  0x17   :  { %p281_p10 = pnand %p279_p9, %p276_p8 }
  0x19   :  { %284 = shalt.err (!%p281_p10)
}
  0x1a   :  { %s285_s12 = scalar_lea.vmem %s379_s18, 256  ;;  %p290_p12 = scmp.lt.s32.totalorder %s379_s18, %s379_s18 }
  0x1b   :  { %p286_p11 = scmp.ne.s32.totalorder %s379_s18, %s285_s12  ;;  %p291_p13 = scmp.lt.s32.totalorder %s285_s12, %s285_s12 }
  0x1d   :  { %p292_p0 = por %p291_p13, %p290_p12 }
  0x1f   :  { %p293_p1 = pnand %p292_p0, %p286_p11 }
  0x21   :  { %296 = shalt.err (!%p293_p1)
}
  0x22   :  { %23 = dma.hbm_to_vmem [thread:$0]  %s459_s0, 256, %s379_s18, [#allocation4], %s349_s27, %s349_s27, %s350_s28  }
  0x23   :  { %s351_s14 = smov [#allocation8]   ;;  %s297_s19 = scalar_lea.hbm %s462_s3, 256 }
  0x24   :  { %s43_s15 = sshll.u32 %s351_s14, 4  ;;  %p298_p2 = scmp.ne.s32.totalorder %s462_s3, %s297_s19  ;;  %s44_s15 = int_to_ptr.vmem [resolvable:$true] %s43_s15 }
  0x25   :  { %p301_p3 = scmp.lt.u32.totalorder %s297_s19, %s462_s3 }
  0x27   :  { %p303_p4 = pnand %p301_p3, %p298_p2 }
  0x29   :  { %306 = shalt.err (!%p303_p4)
}
  0x2a   :  { %s307_s24 = scalar_lea.vmem %s44_s15, 256  ;;  %p312_p6 = scmp.lt.s32.totalorder %s44_s15, %s44_s15 }
  0x2b   :  { %p308_p5 = scmp.ne.s32.totalorder %s44_s15, %s307_s24  ;;  %p313_p7 = scmp.lt.s32.totalorder %s307_s24, %s307_s24 }
  0x2d   :  { %p314_p8 = por %p313_p7, %p312_p6 }
  0x2f   :  { %p315_p9 = pnand %p314_p8, %p308_p5 }
  0x31   :  { %318 = shalt.err (!%p315_p9)
}
  0x32   :  { %49 = dma.hbm_to_vmem [thread:$0]  %s462_s3, 256, %s44_s15, [#allocation7], %s349_s27, %s349_s27, %s350_s28  }
  0x33   :  { %341 = dma.done.wait [#allocation4], 256  }
  0x34   :  { %342 = vsyncadd [#allocation4], 4294967040 }
  0x35   :  { %343 = dma.done.wait [#allocation7], 768  }
  0x36   :  { %344 = vsyncadd [#allocation7], 4294966528  ;;  %vm63_vm0 = vcmask 261120   ;;  %v352_v0 = vmov 0.0   ;;  %v68_v1 = vld [vmem:[#allocation6] sm:$0xff]  ;;  %v69_v2 = vld [vmem:[#allocation6 + $0x8] sm:$0xff] }
  0x37   :  { %65 = vst.msk [vmem:[#allocation2 + $0x8] sm:$0xff] %vm63_vm0, %v352_v0  ;;  %64 = vst.msk [vmem:[#allocation2] sm:$0xff] %vm63_vm0, %v352_v0  ;;  %v70_v3 = vld [vmem:[#allocation6 + $0x10] sm:$0xff]  ;;  %v234_v4 = vpack.c.bf16 %v69_v2, %v68_v1  ;;  %v71_v5 = vld [vmem:[#allocation6 + $0x18] sm:$0xff]  ;;  %s353_s26 = smov [#allocation9]  }
  0x38   :  { %vm235_vm1 = vmpackc.low %vm63_vm0, %vm63_vm0  ;;  %v66_v6 = vld [vmem:[#allocation3] sm:$0xff]  ;;  %v240_v7 = vpack.c.bf16 %v71_v5, %v70_v3  ;;  %v67_v8 = vld [vmem:[#allocation3 + $0x8] sm:$0xff]  ;;  %s197_s29 = sshll.u32 %s353_s26, 4  ;;  %s198_s29 = int_to_ptr.vmem [resolvable:$true] %s197_s29 }
  0x39   :  { %231 = vmatprep.mubr.msk.f32.mxu0 %vm63_vm0, %v66_v6  ;;  %236 = vmatprep.subr.msk.bf16.mxu0 %vm235_vm1, %v234_v4  ;;  %v216_v15 = vld [vmem:[%s461_s2] ss:$0 sm:$0xff]  ;;  %v187_v17 = vld [vmem:[#allocation8 + $0x8] sm:$0xff]  ;;  %s319_s30 = scalar_lea.vmem %s198_s29, 256  ;;  %p324_p11 = scmp.lt.s32.totalorder %s198_s29, %s198_s29 }
  0x3a   :  { %239 = vmatpush3.bf16.xpose.msk.msra.mxu0 %vm235_vm1, %v234_v4  ;;  %v186_v20 = vld [vmem:[#allocation8] sm:$0xff]  ;;  %p320_p10 = scmp.ne.s32.totalorder %s198_s29, %s319_s30  ;;  %p325_p12 = scmp.lt.s32.totalorder %s319_s30, %s319_s30 }
  0x3b   :  { %242 = vmatprep.subr.msk.bf16.mxu0 %vm235_vm1, %v240_v7 }
  0x3c   :  { %p326_p13 = por %p325_p12, %p324_p11 }
  0x3e   :  { %v73_v9 = vld [vmem:[#allocation2 + $0x8] sm:$0xff]  ;;  %v72_v10 = vld [vmem:[#allocation2] sm:$0xff]  ;;  %p327_p0 = pnand %p326_p13, %p320_p10 }
  0x42   :  { %245 = vmatpush3.bf16.xpose.msk.msra.mxu0 %vm235_vm1, %v240_v7 }
  0x49   :  { %232 = vmatmul.mubr.msk.f32.vlgmr.msra.gmra.mrb[0].mxu0 %vm63_vm0, %v67_v8 }
 0x11c   :  { %v233_v11 = vpop.f32.mrb[0].mxu0 }
 0x11d   :  { %v169_v12 = vadd.f32 %v233_v11, %v73_v9  ;;  %v159_v13 = vpop.f32.mrb[1].mxu0 }
 0x11e   :  { %v168_v14 = vadd.f32 %v159_v13, %v72_v10 }
 0x11f   :  { %171 = vst.msk [vmem:[#allocation2 + $0x8] sm:$0xff] %vm63_vm0, %v169_v12 }
 0x120   :  { %170 = vst.msk [vmem:[#allocation2] sm:$0xff] %vm63_vm0, %v168_v14 }
 0x126   :  { %v176_v16 = vld [vmem:[#allocation2 + $0x8] sm:$0xff] }
 0x127   :  { %v175_v18 = vld [vmem:[#allocation2] sm:$0xff]  ;;  %v185_v19 = vadd.f32 %v216_v15, %v176_v16 }
 0x128   :  { %v184_v21 = vadd.f32 %v216_v15, %v175_v18 }
 0x129   :  { %v189_v22 = vadd.f32 %v187_v17, %v185_v19 }
 0x12a   :  { %v188_v23 = vadd.f32 %v186_v20, %v184_v21 }
 0x12b   :  { %191 = vst.msk [vmem:[#allocation9 + $0x8] sm:$0xff] %vm63_vm0, %v189_v22 }
 0x12c   :  { %190 = vst.msk [vmem:[#allocation9] sm:$0xff] %vm63_vm0, %v188_v23 }
 0x12d   :  { %330 = shalt.err (!%p327_p0)
}
 0x12e   :  { %s331_s6 = scalar_lea.hbm %s463_s4, 256 }
 0x12f   :  { %p332_p1 = scmp.ne.s32.totalorder %s463_s4, %s331_s6  ;;  %p335_p2 = scmp.lt.u32.totalorder %s331_s6, %s463_s4 }
 0x131   :  { %p337_p3 = pnand %p335_p2, %p332_p1 }
 0x133   :  { %340 = shalt.err (!%p337_p3)
}
 0x134   :  { %203 = dma.vmem_to_hbm [thread:$0]  %s198_s29, 256, %s463_s4, [#allocation5], %s349_s27, %s349_s27, %s350_s28  }
 0x135   :  { %345 = dma.done.wait [#allocation5], 256  }
 0x136   :  { %346 = vsyncadd [#allocation5], 4294967040 }
 0x137   :  { %207 = vsyncpa [#allocation4], 1 }
 0x138   :  { %208 = vsyncpa [#allocation7], 1 }
 0x139   :  { %209 = vsyncpa [#allocation5], 1 }

</bundles_post_ra>
